<compile_context>
chip_gen: v7x
topology: tpu7x:2x2x1
jax: 0.10.0
libtpu: 0.0.40
codegen_flags: <defaults>
</compile_context>

<pallas_src>
import functools
import math

import jax
import jax.numpy as jnp
from jax import lax
from jax.experimental import pallas as pl
from jax.experimental.pallas import tpu as pltpu

_VMEM_LIMIT = 32 * 1024 * 1024  # safe on v5e/v6e/v7x; tiles below are far smaller


# ---------------------------------------------------------------------------
# Kernel 1: row-tiled dense linear  y = x @ W_T + b
# ---------------------------------------------------------------------------
def _linear_kernel(x_ref, w_ref, b_ref, o_ref):
    y = jnp.dot(x_ref[...], w_ref[...], preferred_element_type=jnp.float32)
    o_ref[...] = (y + b_ref[...]).astype(o_ref.dtype)


def pallas_linear(x, w_t, b, *, block_rows=256):
    """x: (N, D_in), w_t: (D_in, D_out), b: (D_out,) -> (N, D_out)."""
    assert block_rows % 8 == 0
    N, d_in = x.shape
    d_out = w_t.shape[1]
    tm = N if N <= block_rows else block_rows
    grid = (pl.cdiv(N, tm),)
    return pl.pallas_call(
        _linear_kernel,
        out_shape=jax.ShapeDtypeStruct((N, d_out), x.dtype),
        grid=grid,
        in_specs=[
            pl.BlockSpec((tm, d_in), lambda i: (i, 0)),
            pl.BlockSpec((d_in, d_out), lambda i: (0, 0)),   # resident across row tiles
            pl.BlockSpec((1, d_out), lambda i: (0, 0)),
        ],
        out_specs=pl.BlockSpec((tm, d_out), lambda i: (i, 0)),
        compiler_params=pltpu.CompilerParams(
            dimension_semantics=("parallel",),
            vmem_limit_bytes=_VMEM_LIMIT),
    )(x, w_t, b.reshape(1, d_out))


# ---------------------------------------------------------------------------
# Kernel 2: fused QKV projection (one wide matmul, three lane-dense outputs)
# ---------------------------------------------------------------------------
def _qkv_kernel(x_ref, w_ref, b_ref, q_ref, k_ref, v_ref, *, d_model):
    y = jnp.dot(x_ref[...], w_ref[...], preferred_element_type=jnp.float32)
    y = (y + b_ref[...]).astype(q_ref.dtype)          # (tm, 3*d_model)
    q_ref[...] = y[:, :d_model]
    k_ref[...] = y[:, d_model:2 * d_model]
    v_ref[...] = y[:, 2 * d_model:]


def pallas_qkv_projection(x, w_qkv, b_qkv, d_model, *, block_rows=256):
    """x: (N, D_in), w_qkv: (D_in, 3*d_model) -> (q, k, v) each (N, d_model)."""
    assert block_rows % 8 == 0
    N, d_in = x.shape
    tm = N if N <= block_rows else block_rows
    grid = (pl.cdiv(N, tm),)
    out = jax.ShapeDtypeStruct((N, d_model), x.dtype)
    return pl.pallas_call(
        functools.partial(_qkv_kernel, d_model=d_model),
        out_shape=(out, out, out),
        grid=grid,
        in_specs=[
            pl.BlockSpec((tm, d_in), lambda i: (i, 0)),
            pl.BlockSpec((d_in, 3 * d_model), lambda i: (0, 0)),
            pl.BlockSpec((1, 3 * d_model), lambda i: (0, 0)),
        ],
        out_specs=(
            pl.BlockSpec((tm, d_model), lambda i: (i, 0)),
            pl.BlockSpec((tm, d_model), lambda i: (i, 0)),
            pl.BlockSpec((tm, d_model), lambda i: (i, 0)),
        ),
        compiler_params=pltpu.CompilerParams(
            dimension_semantics=("parallel",),
            vmem_limit_bytes=_VMEM_LIMIT),
    )(x, w_qkv, b_qkv.reshape(1, 3 * d_model))


# ---------------------------------------------------------------------------
# Kernel 3: multi-head flash attention over (B, S, d_model) layout
#   scores = q @ k^T / sqrt(d_k); masked_fill(mask==0, -1e9); softmax; @ v
# ---------------------------------------------------------------------------
def _mha_flash_kernel(*refs, scale, num_heads, d_k, seq_len_k, tk_blk, has_mask):
    if has_mask:
        q_ref, k_ref, v_ref, mask_ref, o_ref, m_sc, l_sc, acc_sc = refs
    else:
        q_ref, k_ref, v_ref, o_ref, m_sc, l_sc, acc_sc = refs
        mask_ref = None

    ki = pl.program_id(2)
    nk = pl.num_programs(2)

    @pl.when(ki == 0)
    def _init():
        m_sc[...] = jnp.full_like(m_sc, -jnp.inf)
        l_sc[...] = jnp.zeros_like(l_sc)
        acc_sc[...] = jnp.zeros_like(acc_sc)

    q = q_ref[0]                    # (tq, d_model)
    k = k_ref[0]                    # (tk, d_model)
    v = v_ref[0]                    # (tk, d_model)
    tk = k.shape[0]

    keep = None
    if has_mask:
        keep = mask_ref[0].astype(jnp.int32) != 0          # (tq, tk)

    ragged_kv = (seq_len_k % tk_blk) != 0
    if ragged_kv:
        # columns past the real sequence get -inf scores; oob v rows are zeroed
        # so no NaN/Inf garbage leaks through the PV matmul.
        kpos_row = ki * tk_blk + lax.broadcasted_iota(jnp.int32, (1, tk), 1)
        in_bounds = kpos_row < seq_len_k                    # (1, tk)
        kpos_col = ki * tk_blk + lax.broadcasted_iota(jnp.int32, (tk, 1), 0)
        v = jnp.where(kpos_col < seq_len_k, v, 0.0)

    # Per-head unrolled loop (H is small & static); slices are static lane slices.
    for hh in range(num_heads):
        cols = slice(hh * d_k, (hh + 1) * d_k)
        qh = q[:, cols]             # (tq, d_k)
        kh = k[:, cols]             # (tk, d_k)
        vh = v[:, cols]             # (tk, d_k)

        # q @ k^T without materializing a transpose of k.
        s = lax.dot_general(qh, kh, (((1,), (1,)), ((), ())),
                            preferred_element_type=jnp.float32) * scale
        if keep is not None:
            s = jnp.where(keep, s, jnp.float32(-1e9))
        if ragged_kv:
            s = jnp.where(in_bounds, s, -jnp.inf)

        m_prev = m_sc[hh]                                   # (tq, 1)
        m_new = jnp.maximum(m_prev, jnp.max(s, axis=-1, keepdims=True))
        alpha = jnp.exp(m_prev - m_new)
        p = jnp.exp(s - m_new)                              # (tq, tk) f32
        l_sc[hh] = alpha * l_sc[hh] + jnp.sum(p, axis=-1, keepdims=True)
        acc_sc[hh] = alpha * acc_sc[hh] + jnp.dot(
            p.astype(vh.dtype), vh, preferred_element_type=jnp.float32)
        m_sc[hh] = m_new

    @pl.when(ki == nk - 1)
    def _finalize():
        inv_l = pl.reciprocal(l_sc[...], approx=True)       # EUP slot, ~free
        out = jnp.concatenate(
            [acc_sc[hh] * inv_l[hh] for hh in range(num_heads)], axis=-1)
        o_ref[0] = out.astype(o_ref.dtype)                  # lane-dense (tq, d_model)


def pallas_mha_attention(q, k, v, mask_i8, num_heads, *, block_q=256, block_k=256):
    """q: (B, Sq, d_model); k, v: (B, Sk, d_model); mask_i8: (B, Sq, Sk) int8 or None."""
    assert block_q % 8 == 0 and block_k % 128 == 0
    B, Sq, d_model = q.shape
    Sk = k.shape[1]
    d_k = d_model // num_heads
    scale = 1.0 / math.sqrt(d_k)

    tq = Sq if Sq <= block_q else block_q
    tk = Sk if Sk <= block_k else block_k
    nq = pl.cdiv(Sq, tq)
    nk = pl.cdiv(Sk, tk)
    has_mask = mask_i8 is not None

    kernel = functools.partial(
        _mha_flash_kernel, scale=scale, num_heads=num_heads, d_k=d_k,
        seq_len_k=Sk, tk_blk=tk, has_mask=has_mask)

    in_specs = [
        pl.BlockSpec((1, tq, d_model), lambda b, qi, ki: (b, qi, 0)),
        pl.BlockSpec((1, tk, d_model), lambda b, qi, ki: (b, ki, 0)),
        pl.BlockSpec((1, tk, d_model), lambda b, qi, ki: (b, ki, 0)),
    ]
    args = [q, k, v]
    if has_mask:
        in_specs.append(pl.BlockSpec((1, tq, tk), lambda b, qi, ki: (b, qi, ki)))
        args.append(mask_i8)

    return pl.pallas_call(
        kernel,
        out_shape=jax.ShapeDtypeStruct((B, Sq, d_model), q.dtype),
        grid=(B, nq, nk),
        in_specs=in_specs,
        out_specs=pl.BlockSpec((1, tq, d_model), lambda b, qi, ki: (b, qi, 0)),
        scratch_shapes=[
            pltpu.VMEM((num_heads, tq, 1), jnp.float32),    # running max
            pltpu.VMEM((num_heads, tq, 1), jnp.float32),    # running denom
            pltpu.VMEM((num_heads, tq, d_k), jnp.float32),  # running numerator
        ],
        compiler_params=pltpu.CompilerParams(
            dimension_semantics=("parallel", "parallel", "arbitrary"),
            vmem_limit_bytes=_VMEM_LIMIT),
    )(*args)


# ---------------------------------------------------------------------------
# Full MultiHeadedAttention forward
# ---------------------------------------------------------------------------
def multi_headed_attention(params, query, key, value, mask=None, *, h,
                           block_rows=256, block_q=256, block_k=256):
    """query: (B, Sq, d_model); key/value: (B, Sk, d_model) -> (B, Sq, d_model)."""
    B, Sq, d_model = query.shape
    Sk = key.shape[1]
    assert d_model % h == 0

    if (query is key) and (key is value):
        # Self-attention: fused QKV projection (input read once, one wide matmul).
        # In a real model the concatenated weight would be pre-materialized offline.
        w_qkv = jnp.concatenate([params["wq"], params["wk"], params["wv"]], axis=1)
        b_qkv = jnp.concatenate([params["bq"], params["bk"], params["bv"]], axis=0)
        q2d, k2d, v2d = pallas_qkv_projection(
            query.reshape(B * Sq, d_model), w_qkv, b_qkv, d_model,
            block_rows=block_rows)
    else:
        q2d = pallas_linear(query.reshape(B * Sq, d_model),
                            params["wq"], params["bq"], block_rows=block_rows)
        k2d = pallas_linear(key.reshape(B * Sk, d_model),
                            params["wk"], params["bk"], block_rows=block_rows)
        v2d = pallas_linear(value.reshape(B * Sk, d_model),
                            params["wv"], params["bv"], block_rows=block_rows)

    # Contiguous reshapes only — no HBM transposes anywhere.
    q = q2d.reshape(B, Sq, d_model)
    k = k2d.reshape(B, Sk, d_model)
    v = v2d.reshape(B, Sk, d_model)

    mask_i8 = None
    if mask is not None:
        # Same broadcasting semantics as masked_fill(mask.unsqueeze(1) == 0, -1e9),
        # but carried as int8 to cut HBM traffic 4x vs an f32 mask.
        mask_i8 = jnp.broadcast_to(mask != 0, (B, Sq, Sk)).astype(jnp.int8)

    ctx = pallas_mha_attention(q, k, v, mask_i8, h,
                               block_q=block_q, block_k=block_k)

    out2d = pallas_linear(ctx.reshape(B * Sq, d_model),
                          params["wo"], params["bo"], block_rows=block_rows)
    return out2d.reshape(B, Sq, d_model)


# ---------------------------------------------------------------------------
# Pure-JAX reference (for a sanity check)
# ---------------------------------------------------------------------------
def reference_mha(params, query, key, value, mask=None, *, h):
    B, Sq, d_model = query.shape
    Sk = key.shape[1]
    d_k = d_model // h

    def lin(x, w_t, b):
        return x @ w_t + b

    def split(x, S):
        return x.reshape(B, S, h, d_k).transpose(0, 2, 1, 3)

    q = split(lin(query, params["wq"], params["bq"]), Sq)
    k = split(lin(key, params["wk"], params["bk"]), Sk)
    v = split(lin(value, params["wv"], params["bv"]), Sk)
    scores = jnp.einsum("bhqd,bhkd->bhqk", q, k) / math.sqrt(d_k)
    if mask is not None:
        m = jnp.broadcast_to(mask != 0, (B, Sq, Sk))[:, None, :, :]
        scores = jnp.where(m, scores, -1e9)
    p = jax.nn.softmax(scores, axis=-1)
    x = jnp.einsum("bhqk,bhkd->bhqd", p, v)
    x = x.transpose(0, 2, 1, 3).reshape(B, Sq, d_model)
    return lin(x, params["wo"], params["bo"])


if __name__ == "__main__":
    h, d_model = 4, 32

    root = jax.random.PRNGKey(0)
    keys = jax.random.split(root, 16)

    # PyTorch nn.Linear params stored transposed as (in, out).
    def init_linear(kw, kb):
        lim = 1.0 / math.sqrt(d_model)
        w_t = jax.random.uniform(kw, (d_model, d_model), jnp.float32, -lim, lim)
        b = jax.random.uniform(kb, (d_model,), jnp.float32, -lim, lim)
        return w_t, b

    wq, bq = init_linear(keys[0], keys[1])
    wk, bk = init_linear(keys[2], keys[3])
    wv, bv = init_linear(keys[4], keys[5])
    wo, bo = init_linear(keys[6], keys[7])
    params = dict(wq=wq, bq=bq, wk=wk, bk=bk, wv=wv, bv=bv, wo=wo, bo=bo)

    tol = dict(atol=2e-3, rtol=2e-3)  # headroom for approx-reciprocal softmax denom

    # --- Test 1: self-attention (fused QKV path), padding mask, single kv tile.
    B, S = 2, 16
    x = jax.random.normal(keys[8], (B, S, d_model), jnp.float32)
    mask1 = jnp.ones((B, S, S), jnp.float32).at[1, :, -3:].set(0.0)
    out1 = jax.block_until_ready(multi_headed_attention(params, x, x, x, mask1, h=h))
    ref1 = reference_mha(params, x, x, x, mask1, h=h)
    assert out1.shape == (B, S, d_model)
    assert jnp.allclose(out1, ref1, **tol), "test1 (fused self-attn) mismatch"

    # --- Test 2: distinct q/k/v, ragged flash tiling (multiple q & kv tiles).
    B2, S2 = 2, 160
    q_in = jax.random.normal(keys[9], (B2, S2, d_model), jnp.float32)
    k_in = jax.random.normal(keys[10], (B2, S2, d_model), jnp.float32)
    v_in = jax.random.normal(keys[11], (B2, S2, d_model), jnp.float32)
    mask2 = jnp.ones((B2, S2, S2), jnp.float32).at[0, :, -37:].set(0.0)
    out2 = jax.block_until_ready(
        multi_headed_attention(params, q_in, k_in, v_in, mask2, h=h,
                               block_rows=128, block_q=128, block_k=128))
    ref2 = reference_mha(params, q_in, k_in, v_in, mask2, h=h)
    assert jnp.allclose(out2, ref2, **tol), "test2 (tiled flash attn) mismatch"

    # --- Test 3: mask=None code path.
    out3 = jax.block_until_ready(multi_headed_attention(params, x, x, x, None, h=h))
    ref3 = reference_mha(params, x, x, x, None, h=h)
    assert jnp.allclose(out3, ref3, **tol), "test3 (no mask) mismatch"

    print("KERNEL_OK")
</pallas_src>

<mosaic_0001>
module attributes {stable_mosaic.version = 11 : i64} {
  func.func @_qkv_kernel(%arg0: i32, %arg1: memref<32x32xf32, #tpu.memory_space<vmem>>, %arg2: memref<32x96xf32, #tpu.memory_space<vmem>>, %arg3: memref<1x96xf32, #tpu.memory_space<vmem>>, %arg4: memref<32x32xf32, #tpu.memory_space<vmem>>, %arg5: memref<32x32xf32, #tpu.memory_space<vmem>>, %arg6: memref<32x32xf32, #tpu.memory_space<vmem>>) attributes {dimension_semantics = [#tpu.dimension_semantics<parallel>], iteration_bounds = array<i64: 1>, scalar_prefetch = 0 : i64, scratch_operands = 0 : i64, tpu.core_type = #tpu.core_type<tc>, window_params = [{transform_indices = @transform_0, window_bounds = array<i64: 32, 32>}, {pipeline_mode = #tpu.pipeline_mode<synchronous>, transform_indices = @transform_1, window_bounds = array<i64: 32, 96>}, {pipeline_mode = #tpu.pipeline_mode<synchronous>, transform_indices = @transform_2, window_bounds = array<i64: 1, 96>}, {transform_indices = @transform_3, window_bounds = array<i64: 32, 32>}, {transform_indices = @transform_4, window_bounds = array<i64: 32, 32>}, {transform_indices = @transform_5, window_bounds = array<i64: 32, 32>}]} {
    %c0 = arith.constant 0 : index
    %c0_0 = arith.constant 0 : index
    %0 = vector.load %arg1[%c0, %c0_0] : memref<32x32xf32, #tpu.memory_space<vmem>>, vector<32x32xf32>
    %c0_1 = arith.constant 0 : index
    %c0_2 = arith.constant 0 : index
    %1 = vector.load %arg2[%c0_1, %c0_2] : memref<32x96xf32, #tpu.memory_space<vmem>>, vector<32x96xf32>
    %cst = arith.constant dense<0.000000e+00> : vector<32x96xf32>
    %2 = tpu.matmul %0, %1, %cst {dimension_numbers = #tpu.dot_dimension_numbers<[1], [0], [0], [1], [0, 0, 1, 1], [], []>} : vector<32x32xf32>, vector<32x96xf32>, vector<32x96xf32> -> vector<32x96xf32>
    %c0_3 = arith.constant 0 : index
    %c0_4 = arith.constant 0 : index
    %3 = vector.load %arg3[%c0_3, %c0_4] : memref<1x96xf32, #tpu.memory_space<vmem>>, vector<1x96xf32>
    %4 = vector.broadcast %3 : vector<1x96xf32> to vector<32x96xf32>
    %5 = arith.addf %2, %4 : vector<32x96xf32>
    %6 = vector.extract_strided_slice %5 {offsets = [0, 0], sizes = [32, 32], strides = [1, 1]} : vector<32x96xf32> to vector<32x32xf32>
    %c0_5 = arith.constant 0 : index
    %c0_6 = arith.constant 0 : index
    %7 = vector.load %arg4[%c0_5, %c0_6] : memref<32x32xf32, #tpu.memory_space<vmem>>, vector<32x32xf32>
    tpu.vector_store %arg4[%c0_5, %c0_6], %6 {strides = array<i32>} : memref<32x32xf32, #tpu.memory_space<vmem>>, vector<32x32xf32>,
    %8 = vector.extract_strided_slice %5 {offsets = [0, 32], sizes = [32, 32], strides = [1, 1]} : vector<32x96xf32> to vector<32x32xf32>
    %c0_7 = arith.constant 0 : index
    %c0_8 = arith.constant 0 : index
    %9 = vector.load %arg5[%c0_7, %c0_8] : memref<32x32xf32, #tpu.memory_space<vmem>>, vector<32x32xf32>
    tpu.vector_store %arg5[%c0_7, %c0_8], %8 {strides = array<i32>} : memref<32x32xf32, #tpu.memory_space<vmem>>, vector<32x32xf32>,
    %10 = vector.extract_strided_slice %5 {offsets = [0, 64], sizes = [32, 32], strides = [1, 1]} : vector<32x96xf32> to vector<32x32xf32>
    %c0_9 = arith.constant 0 : index
    %c0_10 = arith.constant 0 : index
    %11 = vector.load %arg6[%c0_9, %c0_10] : memref<32x32xf32, #tpu.memory_space<vmem>>, vector<32x32xf32>
    tpu.vector_store %arg6[%c0_9, %c0_10], %10 {strides = array<i32>} : memref<32x32xf32, #tpu.memory_space<vmem>>, vector<32x32xf32>,
    return
  }
  func.func @transform_0(%arg0: i32) -> (i32, i32) {
    %c0_i32 = arith.constant 0 : i32
    %c0_i32_0 = arith.constant 0 : i32
    return %arg0, %c0_i32 : i32, i32
  }
  func.func @transform_1(%arg0: i32) -> (i32, i32) {
    %c0_i32 = arith.constant 0 : i32
    %c0_i32_0 = arith.constant 0 : i32
    %c0_i32_1 = arith.constant 0 : i32
    return %c0_i32, %c0_i32_0 : i32, i32
  }
  func.func @transform_2(%arg0: i32) -> (i32, i32) {
    %c0_i32 = arith.constant 0 : i32
    %c0_i32_0 = arith.constant 0 : i32
    %c0_i32_1 = arith.constant 0 : i32
    return %c0_i32, %c0_i32_0 : i32, i32
  }
  func.func @transform_3(%arg0: i32) -> (i32, i32) {
    %c0_i32 = arith.constant 0 : i32
    %c0_i32_0 = arith.constant 0 : i32
    return %arg0, %c0_i32 : i32, i32
  }
  func.func @transform_4(%arg0: i32) -> (i32, i32) {
    %c0_i32 = arith.constant 0 : i32
    %c0_i32_0 = arith.constant 0 : i32
    return %arg0, %c0_i32 : i32, i32
  }
  func.func @transform_5(%arg0: i32) -> (i32, i32) {
    %c0_i32 = arith.constant 0 : i32
    %c0_i32_0 = arith.constant 0 : i32
    return %arg0, %c0_i32 : i32, i32
  }
}

</mosaic_0001>

<bundles_post_ra>
// kernel: tpu_custom_call.1
= control target key start
LH: loop header
LB: loop body
LE: loop exit
PB: predicated region body
PF: predicated region fallthrough
CT: control target
= control target key end

     0   :  { %11 = vsyncpa [#allocation3], 0  ;;  %s548_s0 = inlined_call_operand.hbm [shape: f32[32,32], index: 0, kind: input, shape index: {}]   ;;  %s549_s1 = inlined_call_operand.hbm [shape: f32[32,96], index: 1, kind: input, shape index: {}]   ;;  %s550_s2 = inlined_call_operand.vmem [shape: f32[1,96], index: 2, kind: input, shape index: {}]   ;;  %s551_s3 = inlined_call_operand.hbm [shape: f32[32,32], index: 3, kind: output, shape index: {0}]   ;;  %s552_s4 = inlined_call_operand.hbm [shape: f32[32,32], index: 4, kind: output, shape index: {1}]   ;;  %s553_s5 = inlined_call_operand.hbm [shape: f32[32,32], index: 5, kind: output, shape index: {2}]  }
   0x1   :  { %12 = vsyncpa [#allocation6], 0 }
   0x2   :  { %13 = vsyncpa [#allocation4], 0 }
   0x3   :  { %14 = vsyncpa [#allocation9], 0  ;;  %s415_s18 = smov [#allocation2]   ;;  %s297_s22 = scalar_lea.hbm %s548_s0, 512 }
   0x4   :  { %s20_s19 = sshll.u32 %s415_s18, 4  ;;  %p298_p0 = scmp.ne.s32.totalorder %s548_s0, %s297_s22  ;;  %s21_s19 = int_to_ptr.vmem [resolvable:$true] %s20_s19 }
   0x5   :  { %p301_p1 = scmp.lt.u32.totalorder %s297_s22, %s548_s0 }
   0x7   :  { %p303_p2 = pnand %p301_p1, %p298_p0 }
   0x9   :  { %306 = shalt.err (!%p303_p2)
}
   0xa   :  { %s307_s27 = scalar_lea.vmem %s21_s19, 512  ;;  %p312_p4 = scmp.lt.s32.totalorder %s21_s19, %s21_s19 }
   0xb   :  { %p308_p3 = scmp.ne.s32.totalorder %s21_s19, %s307_s27  ;;  %p313_p5 = scmp.lt.s32.totalorder %s307_s27, %s307_s27 }
   0xd   :  { %p314_p6 = por %p313_p5, %p312_p4 }
   0xf   :  { %p315_p7 = pnand %p314_p6, %p308_p3 }
  0x11   :  { %318 = shalt.err (!%p315_p7)
}
  0x12   :  { %s416_s28 = smov 128   ;;  %s417_s29 = smov 8  }
  0x13   :  { %26 = dma.hbm_to_vmem [thread:$0]  %s548_s0, 512, %s21_s19, [#allocation3], %s416_s28, %s416_s28, %s417_s29  }
  0x14   :  { %s418_s7 = smov [#allocation5]   ;;  %s319_s11 = scalar_lea.hbm %s549_s1, 512 }
  0x15   :  { %s32_s8 = sshll.u32 %s418_s7, 4  ;;  %p320_p8 = scmp.ne.s32.totalorder %s549_s1, %s319_s11  ;;  %s33_s8 = int_to_ptr.vmem [resolvable:$true] %s32_s8 }
  0x16   :  { %p323_p9 = scmp.lt.u32.totalorder %s319_s11, %s549_s1 }
  0x18   :  { %p325_p10 = pnand %p323_p9, %p320_p8 }
  0x1a   :  { %328 = shalt.err (!%p325_p10)
}
  0x1b   :  { %s329_s16 = scalar_lea.vmem %s33_s8, 512  ;;  %p334_p12 = scmp.lt.s32.totalorder %s33_s8, %s33_s8 }
  0x1c   :  { %p330_p11 = scmp.ne.s32.totalorder %s33_s8, %s329_s16  ;;  %p335_p13 = scmp.lt.s32.totalorder %s329_s16, %s329_s16 }
  0x1e   :  { %p336_p0 = por %p335_p13, %p334_p12 }
  0x20   :  { %p337_p1 = pnand %p336_p0, %p330_p11 }
  0x22   :  { %340 = shalt.err (!%p337_p1)
}
  0x23   :  { %38 = dma.hbm_to_vmem [thread:$0]  %s549_s1, 512, %s33_s8, [#allocation6], %s416_s28, %s416_s28, %s417_s29  }
  0x24   :  { %407 = dma.done.wait [#allocation3], 512  }
  0x25   :  { %408 = vsyncadd [#allocation3], 4294966784 }
  0x26   :  { %409 = dma.done.wait [#allocation6], 512  }
  0x27   :  { %410 = vsyncadd [#allocation6], 4294966784  ;;  %vm62_vm0 = vcmask 261120   ;;  %v51_v0 = vld [vmem:[#allocation5] sm:$0xff]  ;;  %v52_v1 = vld [vmem:[#allocation5 + $0x8] sm:$0xff]  ;;  %s419_s19 = smov [#allocation7]  }
  0x28   :  { %v53_v2 = vld [vmem:[#allocation5 + $0x10] sm:$0xff]  ;;  %v276_v3 = vpack.c.bf16 %v52_v1, %v51_v0  ;;  %v54_v4 = vld [vmem:[#allocation5 + $0x18] sm:$0xff]  ;;  %v47_v5 = vld [vmem:[#allocation2] sm:$0xff]  ;;  %s205_s20 = sshll.u32 %s419_s19, 4  ;;  %s420_s21 = smov 96   ;;  %s206_s20 = int_to_ptr.vmem [resolvable:$true] %s205_s20 }
  0x29   :  { %v49_v6 = vld [vmem:[#allocation2 + $0x10] sm:$0xff]  ;;  %v280_v7 = vpack.c.bf16 %v54_v4, %v53_v2  ;;  %270 = vmatprep.mubr.msk.f32.mxu0 %vm62_vm0, %v47_v5  ;;  %v48_v8 = vld [vmem:[#allocation2 + $0x8] sm:$0xff]  ;;  %v50_v9 = vld [vmem:[#allocation2 + $0x18] sm:$0xff]  ;;  %p346_p3 = scmp.lt.s32.totalorder %s206_s20, %s206_s20 }
  0x2a   :  { %273 = vmatprep.mubr.msk.f32.mxu1 %vm62_vm0, %v49_v6  ;;  %277 = vmatprep.subr.bf16.mxu0 %v276_v3  ;;  %v249_v10 = vld [vmem:[%s550_s2] ss:$0 sm:$0xff]  ;;  %s341_s2 = scalar_lea.vmem %s206_s20, 512 }
  0x2b   :  { %284 = vmatprep.subr.bf16.mxu1 %v276_v3  ;;  %279 = vmatpush3.bf16.msra.mxu0 %v276_v3  ;;  %p342_p2 = scmp.ne.s32.totalorder %s206_s20, %s341_s2  ;;  %p347_p4 = scmp.lt.s32.totalorder %s341_s2, %s341_s2 }
  0x2c   :  { %286 = vmatpush3.bf16.msra.mxu1 %v276_v3  ;;  %281 = vmatprep.subr.bf16.mxu0 %v280_v7 }
  0x2d   :  { %285 = vmatprep.subr.bf16.mxu1 %v280_v7  ;;  %p348_p5 = por %p347_p4, %p346_p3 }
  0x2f   :  { %283 = vmatpush3.bf16.msra.mxu0 %v280_v7  ;;  %p349_p6 = pnand %p348_p5, %p342_p2 }
  0x30   :  { %287 = vmatpush3.bf16.msra.mxu1 %v280_v7 }
  0x32   :  { %271 = vmatmul.mubr.msk.f32.vlgmr.msra.gmra.mrb[0].mxu0 %vm62_vm0, %v48_v8 }
  0x33   :  { %274 = vmatmul.mubr.msk.f32.vlgmr.msra.gmra.mrb[0].mxu1 %vm62_vm0, %v50_v9 }
 0x105   :  { %v272_v11 = vpop.f32.mrb[0].mxu0 }
 0x106   :  { %v275_v12 = vpop.f32.mrb[0].mxu1  ;;  %v147_v13 = vadd.f32 %v272_v11, %v249_v10  ;;  %v141_v15 = vpop.f32.mrb[1].mxu0 }
 0x107   :  { %v157_v14 = vadd.f32 %v275_v12, %v249_v10  ;;  %v151_v16 = vpop.f32.mrb[1].mxu1  ;;  %v142_v17 = vadd.f32 %v249_v10, %v141_v15 }
 0x108   :  { %v152_v18 = vadd.f32 %v249_v10, %v151_v16  ;;  %161 = vst.msk [vmem:[#allocation7 + $0x8] sm:$0xff] %vm62_vm0, %v147_v13  ;;  %170 = vrot.lane.b32.xlu0 %v147_v13, %s420_s21 }
 0x109   :  { %163 = vst.msk [vmem:[#allocation7 + $0x18] sm:$0xff] %vm62_vm0, %v157_v14  ;;  %174 = vrot.lane.b32.xlu1 %v157_v14, %s420_s21  ;;  %160 = vst.msk [vmem:[#allocation7] sm:$0xff] %vm62_vm0, %v142_v17 }
 0x10a   :  { %162 = vst.msk [vmem:[#allocation7 + $0x10] sm:$0xff] %vm62_vm0, %v152_v18 }
 0x10b   :  { %352 = shalt.err (!%p349_p6)
}
 0x10c   :  { %s353_s24 = scalar_lea.hbm %s551_s3, 512 }
 0x10d   :  { %p354_p7 = scmp.ne.s32.totalorder %s551_s3, %s353_s24  ;;  %p357_p8 = scmp.lt.u32.totalorder %s353_s24, %s551_s3 }
 0x10f   :  { %p359_p9 = pnand %p357_p8, %p354_p7 }
 0x111   :  { %362 = shalt.err (!%p359_p9)
}
 0x112   :  { %211 = dma.vmem_to_hbm [thread:$0]  %s206_s20, 512, %s551_s3, [#allocation4], %s416_s28, %s416_s28, %s417_s29  }
 0x113   :  { %s421_s8 = smov 64   ;;  %168 = vrot.lane.b32.xlu0 %v142_v17, %s420_s21  ;;  %s422_s9 = smov [#allocation8]  }
 0x114   :  { %186 = vrot.lane.b32.xlu1 %v147_v13, %s421_s8  ;;  %s217_s10 = sshll.u32 %s422_s9, 4  ;;  %s423_s3 = smov [#allocation10]   ;;  %s218_s10 = int_to_ptr.vmem [resolvable:$true] %s217_s10 }
 0x115   :  { %s229_s11 = sshll.u32 %s423_s3, 4  ;;  %s363_s12 = scalar_lea.vmem %s218_s10, 512  ;;  %s230_s11 = int_to_ptr.vmem [resolvable:$true] %s229_s11 }
 0x116   :  { %p364_p10 = scmp.ne.s32.totalorder %s218_s10, %s363_s12  ;;  %p368_p11 = scmp.lt.s32.totalorder %s218_s10, %s218_s10 }
 0x117   :  { %184 = vrot.lane.b32.xlu0 %v142_v17, %s421_s8  ;;  %p369_p12 = scmp.lt.s32.totalorder %s363_s12, %s363_s12 }
 0x118   :  { %172 = vrot.lane.b32.xlu1 %v152_v18, %s420_s21 }
 0x119   :  { %p370_p13 = por %p369_p12, %p368_p11 }
 0x11b   :  { %188 = vrot.lane.b32.xlu0 %v152_v18, %s421_s8  ;;  %p371_p0 = pnand %p370_p13, %p364_p10 }
 0x11c   :  { %190 = vrot.lane.b32.xlu1 %v157_v14, %s421_s8 }
 0x17a   :  { %v171_v20 = vpop.permute.xlu0 %170 }
 0x17b   :  { %v175_v19 = vpop.permute.xlu1 %174  ;;  %181 = vst.msk [vmem:[#allocation8 + $0x8] sm:$0xff] %vm62_vm0, %v171_v20 }
 0x17c   :  { %183 = vst.msk [vmem:[#allocation8 + $0x18] sm:$0xff] %vm62_vm0, %v175_v19 }
 0x185   :  { %v169_v22 = vpop.permute.xlu0 %168 }
 0x186   :  { %v187_v21 = vpop.permute.xlu1 %186  ;;  %180 = vst.msk [vmem:[#allocation8] sm:$0xff] %vm62_vm0, %v169_v22 }
 0x187   :  { %197 = vst.msk [vmem:[#allocation10 + $0x8] sm:$0xff] %vm62_vm0, %v187_v21 }
 0x189   :  { %v185_v24 = vpop.permute.xlu0 %184 }
 0x18a   :  { %v173_v23 = vpop.permute.xlu1 %172  ;;  %196 = vst.msk [vmem:[#allocation10] sm:$0xff] %vm62_vm0, %v185_v24 }
 0x18b   :  { %182 = vst.msk [vmem:[#allocation8 + $0x10] sm:$0xff] %vm62_vm0, %v173_v23 }
 0x18c   :  { %374 = shalt.err (!%p371_p0)
}
 0x18d   :  { %s375_s15 = scalar_lea.hbm %s552_s4, 512 }
 0x18e   :  { %p376_p1 = scmp.ne.s32.totalorder %s552_s4, %s375_s15  ;;  %p379_p2 = scmp.lt.u32.totalorder %s375_s15, %s552_s4 }
 0x190   :  { %p381_p3 = pnand %p379_p2, %p376_p1 }
 0x192   :  { %384 = shalt.err (!%p381_p3)
}
 0x193   :  { %223 = dma.vmem_to_hbm [thread:$0]  %s218_s10, 512, %s552_s4, [#allocation9], %s416_s28, %s416_s28, %s417_s29   ;;  %v191_v25 = vpop.permute.xlu1 %190  ;;  %v189_v26 = vpop.permute.xlu0 %188 }
 0x194   :  { %199 = vst.msk [vmem:[#allocation10 + $0x18] sm:$0xff] %vm62_vm0, %v191_v25  ;;  %198 = vst.msk [vmem:[#allocation10 + $0x10] sm:$0xff] %vm62_vm0, %v189_v26  ;;  %s385_s20 = scalar_lea.vmem %s230_s11, 512  ;;  %p390_p5 = scmp.lt.s32.totalorder %s230_s11, %s230_s11 }
 0x195   :  { %p386_p4 = scmp.ne.s32.totalorder %s230_s11, %s385_s20  ;;  %p391_p6 = scmp.lt.s32.totalorder %s385_s20, %s385_s20 }
 0x197   :  { %p392_p7 = por %p391_p6, %p390_p5 }
 0x199   :  { %p393_p8 = pnand %p392_p7, %p386_p4 }
 0x19b   :  { %396 = shalt.err (!%p393_p8)
}
 0x19c   :  { %s397_s22 = scalar_lea.hbm %s553_s5, 512 }
 0x19d   :  { %p398_p9 = scmp.ne.s32.totalorder %s553_s5, %s397_s22  ;;  %p401_p10 = scmp.lt.u32.totalorder %s397_s22, %s553_s5 }
 0x19f   :  { %p403_p11 = pnand %p401_p10, %p398_p9 }
 0x1a1   :  { %406 = shalt.err (!%p403_p11)
}
 0x1a2   :  { %235 = dma.vmem_to_hbm [thread:$0]  %s230_s11, 512, %s553_s5, [#allocation9], %s416_s28, %s416_s28, %s417_s29  }
 0x1a3   :  { %411 = dma.done.wait [#allocation4], 512  }
 0x1a4   :  { %412 = vsyncadd [#allocation4], 4294966784 }
 0x1a5   :  { %413 = dma.done.wait [#allocation9], 1024  }
 0x1a6   :  { %414 = vsyncadd [#allocation9], 4294966272 }
 0x1a7   :  { %245 = vsyncpa [#allocation3], 1 }
 0x1a8   :  { %246 = vsyncpa [#allocation6], 1 }
 0x1a9   :  { %247 = vsyncpa [#allocation4], 1 }
 0x1aa   :  { %248 = vsyncpa [#allocation9], 1 }

</bundles_post_ra>
